<compile_context>
chip_gen: v6e
topology: v6e:2x2x1
jax: 0.10.0
libtpu: 0.0.40
codegen_flags: <defaults>
</compile_context>

<pallas_src>
import functools

import jax
import jax.numpy as jnp
from jax.experimental import pallas as pl
from jax.experimental.pallas import tpu as pltpu


def _mlp_fused_kernel(*refs, n_layers: int):
    # refs = (x_ref, w1, b1, w2, b2, ..., wn, bn, o_ref)
    #   x_ref : (tb, In)        -- module-layout batch tile
    #   w_i   : (out_i, in_i)   -- PyTorch Linear layout, VMEM resident
    #   b_i   : (out_i, 1)      -- VMEM resident
    #   o_ref : (out_dim, tb)   -- transposed (lane-dense) output tile
    x_ref = refs[0]
    o_ref = refs[-1]
    wb = refs[1:-1]

    # Layer 1: contract x's feature axis (last dim) against W's `in` axis.
    # Result is already in the transposed (out_1, tb) layout and stays there.
    h = jax.lax.dot_general(
        wb[0][...], x_ref[...],
        dimension_numbers=(((1,), (1,)), ((), ())),
        preferred_element_type=jnp.float32,
    ) + wb[1][...]
    if n_layers > 1:
        h = jnp.maximum(h, 0.0)            # ReLU on hidden layers only

    for i in range(1, n_layers):
        w_ref, b_ref = wb[2 * i], wb[2 * i + 1]
        h = jnp.dot(w_ref[...], h, preferred_element_type=jnp.float32) + b_ref[...]
        if i != n_layers - 1:
            h = jnp.maximum(h, 0.0)
        # dropout(p=0.0) is identity -> nothing to do

    o_ref[...] = h.astype(o_ref.dtype)


def _choose_batch_tile(B: int, block_b: int) -> int:
    """Lane-dense batch tile: a multiple of 128 (or the whole batch if small)."""
    if B <= 128:
        return B                           # block == full dim, always legal
    cap = min(block_b, B)
    if B >= 256:
        cap = min(cap, B // 2)             # keep >= 2 grid steps for v7x's 2 TCs
    return max(128, (cap // 128) * 128)


def mlp_forward(x, params, *, block_b: int = 1024):
    """Fused MLP forward.

    x      : [B, In] activations (module layout).
    params : list of (W [out, in], b [out, 1]) per layer (PyTorch Linear layout).
    returns: [B, Out]
    """
    B, In = x.shape
    n_layers = len(params)
    out_dim = params[-1][0].shape[0]

    tb = _choose_batch_tile(B, block_b)
    num_blocks = pl.cdiv(B, tb)            # partial tail block is fine (rows independent)

    in_specs = [pl.BlockSpec((tb, In), lambda i: (i, 0))]
    flat_args = [x]
    for (w, b) in params:
        # Full-block, grid-invariant -> resident in VMEM across all grid steps.
        in_specs.append(pl.BlockSpec(w.shape, lambda i: (0, 0)))
        in_specs.append(pl.BlockSpec(b.shape, lambda i: (0, 0)))
        flat_args.append(w)
        flat_args.append(b)

    # VMEM budget: double-buffered x/out tiles + (double-buffered) resident
    # weights/biases + slack.  Only raise the scoped limit when needed; cap at
    # v7x's 64 MiB physical VMEM.
    itemsize = x.dtype.itemsize
    vmem_needed = (2 * tb * (In + out_dim) * itemsize
                   + 2 * sum(int(w.size) + int(b.size) for (w, b) in params) * itemsize
                   + (1 << 20))
    vmem_limit = None if vmem_needed <= (32 << 20) else min(vmem_needed, 64 << 20)

    kernel = functools.partial(_mlp_fused_kernel, n_layers=n_layers)
    out_t = pl.pallas_call(
        kernel,
        out_shape=jax.ShapeDtypeStruct((out_dim, B), x.dtype),
        grid_spec=pl.GridSpec(
            grid=(num_blocks,),
            in_specs=in_specs,
            out_specs=pl.BlockSpec((out_dim, tb), lambda i: (0, i)),
        ),
        compiler_params=pltpu.CompilerParams(
            dimension_semantics=("parallel",),   # shard batch tiles across TCs (v7x)
            vmem_limit_bytes=vmem_limit,
        ),
    )(*flat_args)
    # Back to the module's [batch, features] layout (tiny; layout plumbing only).
    return out_t.T


class MLPPallas:
    """JAX/Pallas equivalent of fastNLP MLP decoder (activation='relu', dropout=0.0)."""

    def __init__(self, size_layer, key, dtype=jnp.float32):
        self.params = []  # list of (W [out, in], b [out, 1]) per layer
        n_layers = len(size_layer) - 1
        keys = jax.random.split(key, n_layers)
        for i in range(1, len(size_layer)):
            fan_in, fan_out = size_layer[i - 1], size_layer[i]
            k_w, k_b = jax.random.split(keys[i - 1])
            # PyTorch nn.Linear default init: U(-1/sqrt(fan_in), 1/sqrt(fan_in))
            bound = 1.0 / (fan_in ** 0.5)
            w = jax.random.uniform(k_w, (fan_out, fan_in), jnp.float32, -bound, bound)
            b = jax.random.uniform(k_b, (fan_out,), jnp.float32, -bound, bound)
            self.params.append((w.astype(dtype), b.reshape(fan_out, 1).astype(dtype)))
        # TODO(synk): training-time dropout (p > 0) not implemented; p=0.0 (inference) only.

    def __call__(self, x, *, block_b: int = 1024):
        return mlp_forward(x, self.params, block_b=block_b)


if __name__ == "__main__":
    key = jax.random.PRNGKey(0)
    k_param, k_x = jax.random.split(key)

    size_layer = [32, 64, 32, 16]   # two hidden layers + output layer
    batch = 256                      # -> tile 128, 2 parallel grid steps (v7x-friendly)

    mlp = MLPPallas(size_layer, k_param)
    x = jax.random.normal(k_x, (batch, size_layer[0]), jnp.float32)

    y = mlp(x)
    jax.block_until_ready(y)

    # sanity check against pure-JAX reference (PyTorch Linear: y = x @ W.T + b)
    ref = x
    n = len(mlp.params)
    for idx, (w, b) in enumerate(mlp.params):
        ref = ref @ w.T + b.reshape(1, -1)
        if idx != n - 1:
            ref = jnp.maximum(ref, 0.0)

    assert y.shape == (batch, size_layer[-1])
    assert jnp.allclose(y, ref, atol=1e-4, rtol=1e-4)

    print("KERNEL_OK")
</pallas_src>

<mosaic_0001>
module attributes {stable_mosaic.version = 11 : i64} {
  func.func @_mlp_fused_kernel(%arg0: i32, %arg1: memref<128x32xf32, #tpu.memory_space<vmem>>, %arg2: memref<64x32xf32, #tpu.memory_space<vmem>>, %arg3: memref<64x1xf32, #tpu.memory_space<vmem>>, %arg4: memref<32x64xf32, #tpu.memory_space<vmem>>, %arg5: memref<32x1xf32, #tpu.memory_space<vmem>>, %arg6: memref<16x32xf32, #tpu.memory_space<vmem>>, %arg7: memref<16x1xf32, #tpu.memory_space<vmem>>, %arg8: memref<16x128xf32, #tpu.memory_space<vmem>>) attributes {dimension_semantics = [#tpu.dimension_semantics<parallel>], iteration_bounds = array<i64: 2>, scalar_prefetch = 0 : i64, scratch_operands = 0 : i64, tpu.core_type = #tpu.core_type<tc>, window_params = [{transform_indices = @transform_0, window_bounds = array<i64: 128, 32>}, {pipeline_mode = #tpu.pipeline_mode<synchronous>, transform_indices = @transform_1, window_bounds = array<i64: 64, 32>}, {pipeline_mode = #tpu.pipeline_mode<synchronous>, transform_indices = @transform_2, window_bounds = array<i64: 64, 1>}, {pipeline_mode = #tpu.pipeline_mode<synchronous>, transform_indices = @transform_3, window_bounds = array<i64: 32, 64>}, {pipeline_mode = #tpu.pipeline_mode<synchronous>, transform_indices = @transform_4, window_bounds = array<i64: 32, 1>}, {pipeline_mode = #tpu.pipeline_mode<synchronous>, transform_indices = @transform_5, window_bounds = array<i64: 16, 32>}, {pipeline_mode = #tpu.pipeline_mode<synchronous>, transform_indices = @transform_6, window_bounds = array<i64: 16, 1>}, {transform_indices = @transform_7, window_bounds = array<i64: 16, 128>}]} {
    %c0 = arith.constant 0 : index
    %c0_0 = arith.constant 0 : index
    %0 = vector.load %arg2[%c0, %c0_0] : memref<64x32xf32, #tpu.memory_space<vmem>>, vector<64x32xf32>
    %c0_1 = arith.constant 0 : index
    %c0_2 = arith.constant 0 : index
    %1 = vector.load %arg1[%c0_1, %c0_2] : memref<128x32xf32, #tpu.memory_space<vmem>>, vector<128x32xf32>
    %cst = arith.constant dense<0.000000e+00> : vector<64x128xf32>
    %2 = tpu.matmul %0, %1, %cst {dimension_numbers = #tpu.dot_dimension_numbers<[1], [1], [0], [0], [0, 0, 1, 0], [], []>} : vector<64x32xf32>, vector<128x32xf32>, vector<64x128xf32> -> vector<64x128xf32>
    %c0_3 = arith.constant 0 : index
    %c0_4 = arith.constant 0 : index
    %3 = vector.load %arg3[%c0_3, %c0_4] : memref<64x1xf32, #tpu.memory_space<vmem>>, vector<64x1xf32>
    %4 = vector.broadcast %3 : vector<64x1xf32> to vector<64x128xf32>
    %5 = arith.addf %2, %4 : vector<64x128xf32>
    %cst_5 = arith.constant 0.000000e+00 : f32
    %6 = vector.broadcast %cst_5 : f32 to vector<64x128xf32>
    %7 = arith.maximumf %5, %6 : vector<64x128xf32>
    %c0_6 = arith.constant 0 : index
    %c0_7 = arith.constant 0 : index
    %8 = vector.load %arg4[%c0_6, %c0_7] : memref<32x64xf32, #tpu.memory_space<vmem>>, vector<32x64xf32>
    %cst_8 = arith.constant dense<0.000000e+00> : vector<32x128xf32>
    %9 = tpu.matmul %8, %7, %cst_8 {dimension_numbers = #tpu.dot_dimension_numbers<[1], [0], [0], [1], [0, 0, 1, 1], [], []>} : vector<32x64xf32>, vector<64x128xf32>, vector<32x128xf32> -> vector<32x128xf32>
    %c0_9 = arith.constant 0 : index
    %c0_10 = arith.constant 0 : index
    %10 = vector.load %arg5[%c0_9, %c0_10] : memref<32x1xf32, #tpu.memory_space<vmem>>, vector<32x1xf32>
    %11 = vector.broadcast %10 : vector<32x1xf32> to vector<32x128xf32>
    %12 = arith.addf %9, %11 : vector<32x128xf32>
    %cst_11 = arith.constant 0.000000e+00 : f32
    %13 = vector.broadcast %cst_11 : f32 to vector<32x128xf32>
    %14 = arith.maximumf %12, %13 : vector<32x128xf32>
    %c0_12 = arith.constant 0 : index
    %c0_13 = arith.constant 0 : index
    %15 = vector.load %arg6[%c0_12, %c0_13] : memref<16x32xf32, #tpu.memory_space<vmem>>, vector<16x32xf32>
    %cst_14 = arith.constant dense<0.000000e+00> : vector<16x128xf32>
    %16 = tpu.matmul %15, %14, %cst_14 {dimension_numbers = #tpu.dot_dimension_numbers<[1], [0], [0], [1], [0, 0, 1, 1], [], []>} : vector<16x32xf32>, vector<32x128xf32>, vector<16x128xf32> -> vector<16x128xf32>
    %c0_15 = arith.constant 0 : index
    %c0_16 = arith.constant 0 : index
    %17 = vector.load %arg7[%c0_15, %c0_16] : memref<16x1xf32, #tpu.memory_space<vmem>>, vector<16x1xf32>
    %18 = vector.broadcast %17 : vector<16x1xf32> to vector<16x128xf32>
    %19 = arith.addf %16, %18 : vector<16x128xf32>
    %c0_17 = arith.constant 0 : index
    %c0_18 = arith.constant 0 : index
    %20 = vector.load %arg8[%c0_17, %c0_18] : memref<16x128xf32, #tpu.memory_space<vmem>>, vector<16x128xf32>
    tpu.vector_store %arg8[%c0_17, %c0_18], %19 {strides = array<i32>} : memref<16x128xf32, #tpu.memory_space<vmem>>, vector<16x128xf32>,
    return
  }
  func.func @transform_0(%arg0: i32) -> (i32, i32) {
    %c0_i32 = arith.constant 0 : i32
    %c0_i32_0 = arith.constant 0 : i32
    return %arg0, %c0_i32 : i32, i32
  }
  func.func @transform_1(%arg0: i32) -> (i32, i32) {
    %c0_i32 = arith.constant 0 : i32
    %c0_i32_0 = arith.constant 0 : i32
    %c0_i32_1 = arith.constant 0 : i32
    return %c0_i32, %c0_i32_0 : i32, i32
  }
  func.func @transform_2(%arg0: i32) -> (i32, i32) {
    %c0_i32 = arith.constant 0 : i32
    %c0_i32_0 = arith.constant 0 : i32
    %c0_i32_1 = arith.constant 0 : i32
    return %c0_i32, %c0_i32_0 : i32, i32
  }
  func.func @transform_3(%arg0: i32) -> (i32, i32) {
    %c0_i32 = arith.constant 0 : i32
    %c0_i32_0 = arith.constant 0 : i32
    %c0_i32_1 = arith.constant 0 : i32
    return %c0_i32, %c0_i32_0 : i32, i32
  }
  func.func @transform_4(%arg0: i32) -> (i32, i32) {
    %c0_i32 = arith.constant 0 : i32
    %c0_i32_0 = arith.constant 0 : i32
    %c0_i32_1 = arith.constant 0 : i32
    return %c0_i32, %c0_i32_0 : i32, i32
  }
  func.func @transform_5(%arg0: i32) -> (i32, i32) {
    %c0_i32 = arith.constant 0 : i32
    %c0_i32_0 = arith.constant 0 : i32
    %c0_i32_1 = arith.constant 0 : i32
    return %c0_i32, %c0_i32_0 : i32, i32
  }
  func.func @transform_6(%arg0: i32) -> (i32, i32) {
    %c0_i32 = arith.constant 0 : i32
    %c0_i32_0 = arith.constant 0 : i32
    %c0_i32_1 = arith.constant 0 : i32
    return %c0_i32, %c0_i32_0 : i32, i32
  }
  func.func @transform_7(%arg0: i32) -> (i32, i32) {
    %c0_i32 = arith.constant 0 : i32
    %c0_i32_0 = arith.constant 0 : i32
    return %c0_i32, %arg0 : i32, i32
  }
}

</mosaic_0001>

<bundles_post_ra>
// kernel: tpu_custom_call.1
= control target key start
LH: loop header
LB: loop body
LE: loop exit
PB: predicated region body
PF: predicated region fallthrough
CT: control target
= control target key end

     0   :  { %12 = vsyncpa [#allocation3], 0  ;;  %s1400_s0 = inlined_call_operand.vmem [shape: f32[256,32], index: 0, kind: input, shape index: {}]   ;;  %s1401_s1 = inlined_call_operand.vmem [shape: f32[64,32], index: 1, kind: input, shape index: {}]   ;;  %s1402_s2 = inlined_call_operand.vmem [shape: f32[64,1], index: 2, kind: input, shape index: {}]   ;;  %s1403_s3 = inlined_call_operand.vmem [shape: f32[32,64], index: 3, kind: input, shape index: {}]   ;;  %s1404_s4 = inlined_call_operand.vmem [shape: f32[32,1], index: 4, kind: input, shape index: {}]   ;;  %s1405_s5 = inlined_call_operand.vmem [shape: f32[16,32], index: 5, kind: input, shape index: {}]   ;;  %s1406_s6 = inlined_call_operand.vmem [shape: f32[16,1], index: 6, kind: input, shape index: {}]   ;;  %s1407_s7 = inlined_call_operand.hbm [shape: f32[16,256], index: 7, kind: output, shape index: {}]  }
   0x1   :  { %14 = vsyncpa [#allocation3 + $0x1], 0  ;;  %s1151_s24 = smov 0   ;;  %s1153_s25 = smov 0  }
   0x2   :  { %s1155_s26 = smov 0   ;;  %s1157_s27 = smov 0  }
   0x3 LB: > { %s1172_s28 = sadd.s32 4294967295, %s1104_s27   ;;  %s839_s29 = sadd.s32 4294967294, %s1104_s27   ;;  %s1104_s27 = sphi %s1157_s27, %s1413_s27   ;;  %s1100_s26 = sphi %s1155_s26, %s1412_s26   ;;  %s1096_s25 = sphi %s1153_s25, %s1411_s25   ;;  %s1092_s24 = sphi %s1151_s24, %s1410_s24  }
   0x4   : > { %s1176_s30 = sadd.s32 1, %s1104_s27   ;;  %s179_s8 = sadd.s32 1, %s1100_s26 }
   0x5   : > { %s176_s9 = ssub.s32 %s1104_s27, %s1176_s30  ;;  %p189_p0 = scmp.ne.s32.totalorder %s1100_s26, %s1096_s25 }
   0x6   : > { %p177_p1 = scmp.eq.s32.totalorder %s176_s9, 0  ;;  %p190_p2 = scmp.eq.s32.totalorder %s1172_s28, 1 }
   0x7   : > { %p195_p3 = scmp.ne.s32.totalorder %s1096_s25, %s1092_s24  ;;  %p196_p4 = scmp.eq.s32.totalorder %s839_s29, 1 }
   0x8   : > { %s1187_s10 = scalar_select %p177_p1, %s1100_s26, %s179_s8  }
   0x9   : > { %p1189_p5 = por %p190_p2, %p189_p0  ;;  %p1193_p6 = por %p196_p4, %p195_p3 }
   0xa   : > { %p842_p7 = scmp.ge.s32.totalorder %s1104_s27, 1  ;;  %p241_p8 = scmp.lt.s32.totalorder %s1104_s27, 3 }
   0xc   : > { %p242_p9 = pnand %p842_p7, %p241_p8 }
   0xd   : > { %s844_s13 = sshll.u32 (!%p242_p9), %s1172_s28, 4  ;;  %s270_s19 = sand.u32 (!%p242_p9), 1, %s1096_s25  }
   0xe   : > { %245 = sbr.rel (%p242_p9) target bundleno = 733 (0x2dd), region = 48  ;;  %p274_p10 = scmp.lt.s32.totalorder (!%p242_p9), %s844_s13, 31 }
   0xf   : > { %s843_s20 = sshll.u32 (!%p242_p9), %s270_s19, 4  ;;  %s877_s23 = sshll.u32 (!%p242_p9), %s1172_s28, 7 }
  0x10   : > { %s272_s21 = scalar_lea.vmem (!%p242_p9), [#allocation2], %s843_s20  ;;  %s1360_s9 = scalar_lea.sflag (!%p242_p9), [#allocation3], %s270_s19 }
  0x13   : > { %vm351_vm0 = vcmask 261120   ;;  %v279_v0 = vld [vmem:[%s1401_s1] sm:$0xff]  ;;  %v1106_v1 = vmov 0   ;;  %v310_v2 = vld [vmem:[%s1402_s2 + $0x38] sm:$0xff]  ;;  %s1415_s13 = smov (!%p274_p10, %s844_s13), 31  ;;  %v308_v3 = vld [vmem:[%s1402_s2 + $0x28] sm:$0xff] }
  0x14   : > { %954 = vmatprep.mubr.msk.f32.mxu0 %vm351_vm0, %v279_v0  ;;  %1042 = vset.pattern.permute.xlu0 %v1106_v1  ;;  %v309_v4 = vld [vmem:[%s1402_s2 + $0x30] sm:$0xff]  ;;  %s845_s22 = sshll.u32 %s1415_s13, 3  ;;  %v307_v5 = vld [vmem:[%s1402_s2 + $0x20] sm:$0xff]  ;;  %v306_v8 = vld [vmem:[%s1402_s2 + $0x18] sm:$0xff]  ;;  %vm565_vm1 = vcmask 523264   ;;  %s1107_s13 = smov [#allocation2]  }
  0x15   : > { %1043 = vset.pattern.permute.xlu1 %v1106_v1  ;;  %348 = vperm.xlu0 %1042, %v310_v2   ;;  %s1219_s14 = scalar_lea.vmem %s1400_s0, %s845_s22  ;;  %v305_v9 = vld [vmem:[%s1402_s2 + $0x10] sm:$0xff]  ;;  %v304_v11 = vld [vmem:[%s1402_s2 + $0x8] sm:$0xff]  ;;  %v303_v12 = vld [vmem:[%s1402_s2] sm:$0xff]  ;;  %s777_s22 = sshll.u32 %s272_s21, 4  ;;  %s1353_s22 = int_to_ptr.vmem [resolvable:$true] %s777_s22 }
  0x16   : > { %338 = vperm.xlu1 %1043, %v308_v3   ;;  %v302_v6 = vld [vmem:[%s1219_s14 + $0x78] sm:$0xff]  ;;  %v301_v7 = vld [vmem:[%s1219_s14 + $0x70] sm:$0xff]  ;;  %v300_v10 = vld [vmem:[%s1219_s14 + $0x68] sm:$0xff]  ;;  %s1044_s28 = scalar_lea.vmem %s1353_s22, 256  ;;  %s1048_s15 = sshll.u32 %s1107_s13, 4  ;;  %s1049_s15 = int_to_ptr.vmem [resolvable:$false] %s1048_s15 }
  0x17   : > { %922 = vmatprep.subr.msk.mxu0 %vm351_vm0, %v302_v6  ;;  %v299_v13 = vld [vmem:[%s1219_s14 + $0x60] sm:$0xff]  ;;  %v544_v14 = vld [vmem:[%s1404_s4 + $0x18] sm:$0xff]  ;;  %v543_v15 = vld [vmem:[%s1404_s4 + $0x10] sm:$0xff]  ;;  %p1045_p11 = scmp.ne.s32.totalorder %s1353_s22, %s1044_s28  ;;  %s1050_s16 = scalar_lea.vmem %s1049_s15, 512 }
  0x18   : > { %923 = vmatpush3.xpose.msk.msra.mxu0 %vm351_vm0, %v302_v6  ;;  %v298_v16 = vld [vmem:[%s1219_s14 + $0x58] sm:$0xff]  ;;  %v542_v17 = vld [vmem:[%s1404_s4 + $0x8] sm:$0xff]  ;;  %v541_v18 = vld [vmem:[%s1404_s4] sm:$0xff]  ;;  %p1051_p0 = scmp.lt.s32.totalorder %s1353_s22, %s1049_s15  ;;  %p1052_p1 = scmp.lt.s32.totalorder %s1050_s16, %s1044_s28 }
  0x19   : > { %343 = vperm.xlu0 %1042, %v309_v4   ;;  %924 = vmatprep.subr.msk.mxu0 %vm351_vm0, %v301_v7  ;;  %v297_v19 = vld [vmem:[%s1219_s14 + $0x50] sm:$0xff]  ;;  %v669_v20 = vld [vmem:[%s1406_s6] sm:$0xff]  ;;  %v670_v21 = vld [vmem:[%s1406_s6 + $0x8] sm:$0xff]  ;;  %p1046_p12 = pnand %p1045_p11, %p1189_p5 }
  0x1a   : > { %333 = vperm.xlu1 %1043, %v307_v5   ;;  %v296_v22 = vld [vmem:[%s1219_s14 + $0x48] sm:$0xff]  ;;  %v295_v23 = vld [vmem:[%s1219_s14 + $0x40] sm:$0xff]  ;;  %v294_v24 = vld [vmem:[%s1219_s14 + $0x38] sm:$0xff]  ;;  %p1053_p2 = por %p1052_p1, %p1051_p0 }
  0x1b   : > { %v293_v25 = vld [vmem:[%s1219_s14 + $0x30] sm:$0xff]  ;;  %v292_v26 = vld [vmem:[%s1219_s14 + $0x28] sm:$0xff]  ;;  %v291_v27 = vld [vmem:[%s1219_s14 + $0x20] sm:$0xff]  ;;  %p1047_p13 = pneg %p1046_p12 }
  0x1c   : > { %925 = vmatpush3.xpose.msk.msra.mxu0 %vm351_vm0, %v301_v7  ;;  %v290_v28 = vld [vmem:[%s1219_s14 + $0x18] sm:$0xff]  ;;  %v289_v29 = vld [vmem:[%s1219_s14 + $0x10] sm:$0xff]  ;;  %v288_v30 = vld [vmem:[%s1219_s14 + $0x8] sm:$0xff] }
  0x1d   : > { %328 = vperm.xlu0 %1042, %v306_v8   ;;  %926 = vmatprep.subr.msk.mxu0 %vm351_vm0, %v300_v10  ;;  %v287_v31 = vld [vmem:[%s1219_s14] sm:$0xff]  ;;  %v280_v32 = vld [vmem:[%s1401_s1 + $0x8] sm:$0xff]  ;;  %v281_v33 = vld [vmem:[%s1401_s1 + $0x10] sm:$0xff]  ;;  %s1358_s14 = scalar_lea.hbm %s1407_s7, %s877_s23  ;;  %p1054_p3 = pnand %p1053_p2, %p1047_p13 }
  0x1e   : > { %323 = vperm.xlu1 %1043, %v305_v9   ;;  %v282_v34 = vld [vmem:[%s1401_s1 + $0x18] sm:$0xff]  ;;  %v283_v35 = vld [vmem:[%s1401_s1 + $0x20] sm:$0xff]  ;;  %v284_v36 = vld [vmem:[%s1401_s1 + $0x28] sm:$0xff] }
  0x1f   : > { %v285_v37 = vld [vmem:[%s1401_s1 + $0x30] sm:$0xff]  ;;  %v286_v38 = vld [vmem:[%s1401_s1 + $0x38] sm:$0xff]  ;;  %v537_v39 = vld [vmem:[%s1403_s3] sm:$0xff] }
  0x20   : > { %927 = vmatpush3.xpose.msk.msra.mxu0 %vm351_vm0, %v300_v10  ;;  %982 = vmatprep.mubr.msk.f32.mxu1 %vm565_vm1, %v537_v39  ;;  %v538_v8 = vld [vmem:[%s1403_s3 + $0x8] sm:$0xff]  ;;  %v539_v9 = vld [vmem:[%s1403_s3 + $0x10] sm:$0xff]  ;;  %v540_v10 = vld [vmem:[%s1403_s3 + $0x18] sm:$0xff] }
  0x21   : > { %318 = vperm.xlu0 %1042, %v304_v11   ;;  %928 = vmatprep.subr.msk.mxu0 %vm351_vm0, %v299_v13  ;;  %v667_v11 = vld [vmem:[%s1405_s5] sm:$0xff] }
  0x22   : > { %313 = vperm.xlu1 %1043, %v303_v12  }
  0x24   : > { %929 = vmatpush3.xpose.msk.msra.mxu0 %vm351_vm0, %v299_v13 }
  0x25   : > { %562 = vperm.xlu0 %1042, %v544_v14   ;;  %930 = vmatprep.subr.msk.mxu0 %vm351_vm0, %v298_v16 }
  0x26   : > { %557 = vperm.xlu1 %1043, %v543_v15  }
  0x28   : > { %931 = vmatpush3.xpose.msk.msra.mxu0 %vm351_vm0, %v298_v16 }
  0x29   : > { %552 = vperm.xlu0 %1042, %v542_v17   ;;  %932 = vmatprep.subr.msk.mxu0 %vm351_vm0, %v297_v19 }
  0x2a   : > { %547 = vperm.xlu1 %1043, %v541_v18  }
  0x2c   : > { %933 = vmatpush3.xpose.msk.msra.mxu0 %vm351_vm0, %v297_v19 }
  0x2d   : > { %673 = vperm.xlu0 %1042, %v669_v20   ;;  %934 = vmatprep.subr.msk.mxu0 %vm351_vm0, %v296_v22 }
  0x2e   : > { %678 = vperm.xlu1 %1043, %v670_v21  }
  0x30   : > { %935 = vmatpush3.xpose.msk.msra.mxu0 %vm351_vm0, %v296_v22 }
  0x31   : > { %936 = vmatprep.subr.msk.mxu0 %vm351_vm0, %v295_v23 }
  0x34   : > { %937 = vmatpush3.xpose.msk.msra.mxu0 %vm351_vm0, %v295_v23 }
  0x35   : > { %938 = vmatprep.subr.msk.mxu0 %vm351_vm0, %v294_v24 }
  0x38   : > { %939 = vmatpush3.xpose.msk.msra.mxu0 %vm351_vm0, %v294_v24 }
  0x39   : > { %940 = vmatprep.subr.msk.mxu0 %vm351_vm0, %v293_v25 }
  0x3c   : > { %941 = vmatpush3.xpose.msk.msra.mxu0 %vm351_vm0, %v293_v25 }
  0x3d   : > { %942 = vmatprep.subr.msk.mxu0 %vm351_vm0, %v292_v26 }
  0x40   : > { %943 = vmatpush3.xpose.msk.msra.mxu0 %vm351_vm0, %v292_v26 }
  0x41   : > { %944 = vmatprep.subr.msk.mxu0 %vm351_vm0, %v291_v27 }
  0x44   : > { %945 = vmatpush3.xpose.msk.msra.mxu0 %vm351_vm0, %v291_v27 }
  0x45   : > { %946 = vmatprep.subr.msk.mxu0 %vm351_vm0, %v290_v28 }
  0x48   : > { %947 = vmatpush3.xpose.msk.msra.mxu0 %vm351_vm0, %v290_v28  ;;  %v668_v28 = vld [vmem:[%s1405_s5 + $0x8] sm:$0xff] }
  0x49   : > { %948 = vmatprep.subr.msk.mxu0 %vm351_vm0, %v289_v29 }
  0x4c   : > { %949 = vmatpush3.xpose.msk.msra.mxu0 %vm351_vm0, %v289_v29 }
  0x4d   : > { %950 = vmatprep.subr.msk.mxu0 %vm351_vm0, %v288_v30 }
  0x50   : > { %951 = vmatpush3.xpose.msk.msra.mxu0 %vm351_vm0, %v288_v30 }
  0x51   : > { %952 = vmatprep.subr.msk.mxu0 %vm351_vm0, %v287_v31 }
  0x54   : > { %953 = vmatpush3.xpose.msk.msra.mxu0 %vm351_vm0, %v287_v31 }
  0x57   : > { %955 = vmatmul.mubr.msk.f32.vlgmr.msra.gmra.mxu0 %vm351_vm0, %v280_v32 }
  0x58   : > { %957 = vmatprep.mubr.msk.f32.mxu0 %vm351_vm0, %v281_v33 }
  0x5b   : > { %958 = vmatmul.mubr.msk.f32.gmra.mxu0 %vm351_vm0, %v282_v34 }
  0x5c   : > { %960 = vmatprep.mubr.msk.f32.mxu0 %vm351_vm0, %v283_v35 }
  0x5f   : > { %961 = vmatmul.mubr.msk.f32.gmra.mxu0 %vm351_vm0, %v284_v36 }
  0x60   : > { %963 = vmatprep.mubr.msk.f32.mxu0 %vm351_vm0, %v285_v37 }
  0x63   : > { %964 = vmatmul.mubr.msk.f32.gmra.mxu0 %vm351_vm0, %v286_v38 }
  0x90   : > { %v349_v42 = vpop.permute.xlu0 %348 }
  0x91   : > { %v339_v43 = vpop.permute.xlu1 %338 }
  0x94   : > { %v344_v47 = vpop.permute.xlu0 %343 }
  0x95   : > { %v334_v48 = vpop.permute.xlu1 %333 }
  0x98   : > { %v329_v56 = vpop.permute.xlu0 %328 }
  0x99   : > { %v324_v57 = vpop.permute.xlu1 %323 }
  0x9c   : > { %v319_v0 = vpop.permute.xlu0 %318 }
  0x9d   : > { %v314_v1 = vpop.permute.xlu1 %313 }
  0xa0   : > { %v563_v12 = vpop.permute.xlu0 %562 }
  0xa1   : > { %v558_v14 = vpop.permute.xlu1 %557 }
  0xa4   : > { %v553_v18 = vpop.permute.xlu0 %552 }
  0xa5   : > { %v548_v23 = vpop.permute.xlu1 %547 }
  0xa8   : > { %v674_v32 = vpop.permute.xlu0 %673 }
  0xa9   : > { %v679_v29 = vpop.permute.xlu1 %678 }
 0x117   : > { %v956_v40 = vpop.f32.mrf.mxu0 }
 0x118   : > { %v496_v2 = vadd.f32 %v956_v40, %v319_v0 }
 0x119   : > { %v490_v41 = vpop.f32.mrf.mxu0 }
 0x11a   : > { %v491_v4 = vadd.f32 %v490_v41, %v314_v1  ;;  %v530_v6 = vmax.f32 %v496_v2, 0.0 }
 0x11b   : > { %v959_v44 = vpop.f32.mrf.mxu0 }
 0x11c   : > { %v506_v60 = vadd.f32 %v959_v44, %v329_v56  ;;  %v529_v7 = vmax.f32 %v491_v4, 0.0 }
 0x11d   : > { %v500_v45 = vpop.f32.mrf.mxu0 }
 0x11e   : > { %v501_v62 = vadd.f32 %v500_v45, %v324_v57  ;;  %v532_v3 = vmax.f32 %v506_v60, 0.0 }
 0x11f   : > { %v962_v46 = vpop.f32.mrf.mxu0 }
 0x120   : > { %v516_v53 = vadd.f32 %v962_v46, %v339_v43  ;;  %v531_v5 = vmax.f32 %v501_v62, 0.0 }
 0x121   : > { %v510_v49 = vpop.f32.mrf.mxu0 }
 0x122   : > { %v511_v58 = vadd.f32 %v510_v49, %v334_v48  ;;  %v534_v61 = vmax.f32 %v516_v53, 0.0 }
 0x123   : > { %v965_v50 = vpop.f32.mrf.mxu0 }
 0x124   : > { %v526_v51 = vadd.f32 %v965_v50, %v349_v42  ;;  %v533_v63 = vmax.f32 %v511_v58, 0.0 }
 0x125   : > { %v520_v52 = vpop.f32.mrf.mxu0 }
 0x126   : > { %v536_v54 = vmax.f32 %v526_v51, 0.0  ;;  %v521_v55 = vadd.f32 %v520_v52, %v344_v47 }
 0x128   : > { %v535_v59 = vmax.f32 %v521_v55, 0.0  ;;  %966 = vmatprep.subr.mxu1 %v536_v54 }
 0x129   : > { %967 = vmatpush3.msra.mxu1 %v536_v54 }
 0x12a   : > { %968 = vmatprep.subr.mxu1 %v535_v59 }
 0x12b   : > { %969 = vmatpush3.msra.mxu1 %v535_v59 }
 0x12c   : > { %970 = vmatprep.subr.mxu1 %v534_v61 }
 0x12d   : > { %971 = vmatpush3.msra.mxu1 %v534_v61 }
 0x12e   : > { %972 = vmatprep.subr.mxu1 %v533_v63 }
 0x12f   : > { %973 = vmatpush3.msra.mxu1 %v533_v63 }
 0x130   : > { %974 = vmatprep.subr.mxu1 %v532_v3 }
 0x131   : > { %975 = vmatpush3.msra.mxu1 %v532_v3 }
 0x132   : > { %976 = vmatprep.subr.mxu1 %v531_v5 }
 0x133   : > { %977 = vmatpush3.msra.mxu1 %v531_v5 }
 0x134   : > { %978 = vmatprep.subr.mxu1 %v530_v6 }
 0x135   : > { %979 = vmatpush3.msra.mxu1 %v530_v6 }
 0x136   : > { %980 = vmatprep.subr.mxu1 %v529_v7 }
 0x137   : > { %981 = vmatpush3.msra.mxu1 %v529_v7 }
 0x138   : > { %983 = vmatmul.mubr.msk.f32.vlgmr.msra.gmra.mxu1 %vm565_vm1, %v538_v8 }
 0x139   : > { %985 = vmatprep.mubr.msk.f32.mxu1 %vm565_vm1, %v539_v9 }
 0x13c   : > { %986 = vmatmul.mubr.msk.f32.gmra.mxu1 %vm565_vm1, %v540_v10 }
 0x13d   : > { %996 = vmatprep.mubr.msk.f32.mxu1 %vm351_vm0, %v667_v11 }
 0x1f8   : > { %v984_v13 = vpop.f32.mrf.mxu1 }
 0x1f9   : > { %v650_v20 = vadd.f32 %v984_v13, %v553_v18 }
 0x1fa   : > { %v644_v15 = vpop.f32.mrf.mxu1 }
 0x1fb   : > { %v645_v24 = vadd.f32 %v644_v15, %v548_v23  ;;  %v664_v26 = vmax.f32 %v650_v20, 0.0 }
 0x1fc   : > { %v987_v16 = vpop.f32.mrf.mxu1 }
 0x1fd   : > { %v660_v17 = vadd.f32 %v987_v16, %v563_v12  ;;  %v663_v27 = vmax.f32 %v645_v24, 0.0 }
 0x1fe   : > { %v654_v19 = vpop.f32.mrf.mxu1 }
 0x1ff   : > { %v666_v21 = vmax.f32 %v660_v17, 0.0  ;;  %v655_v22 = vadd.f32 %v654_v19, %v558_v14 }
 0x201   : > { %v665_v25 = vmax.f32 %v655_v22, 0.0  ;;  %988 = vmatprep.subr.mxu1 %v666_v21 }
 0x202   : > { %989 = vmatpush3.msra.mxu1 %v666_v21 }
 0x203   : > { %990 = vmatprep.subr.mxu1 %v665_v25 }
 0x204   : > { %991 = vmatpush3.msra.mxu1 %v665_v25 }
 0x205   : > { %992 = vmatprep.subr.mxu1 %v664_v26 }
 0x206   : > { %993 = vmatpush3.msra.mxu1 %v664_v26 }
 0x207   : > { %994 = vmatprep.subr.mxu1 %v663_v27 }
 0x208   : > { %995 = vmatpush3.msra.mxu1 %v663_v27 }
 0x209   : > { %997 = vmatmul.mubr.msk.f32.vlgmr.msra.gmra.mxu1 %vm351_vm0, %v668_v28 }
 0x2c9   : > { %v998_v30 = vpop.f32.mrf.mxu1 }
 0x2ca   : > { %v759_v31 = vadd.f32 %v998_v30, %v679_v29 }
 0x2cb   : > { %v753_v33 = vpop.f32.mrf.mxu1 }
 0x2cc   : > { %763 = vst [vmem:[%s272_s21 + $0x8] sm:$0xff] %v759_v31  ;;  %v754_v34 = vadd.f32 %v753_v33, %v674_v32 }
 0x2ce   : > { %762 = vst [vmem:[%s272_s21] sm:$0xff] %v754_v34 }
 0x2cf   : > { %1057 = shalt.err (!%p1054_p3)
}
 0x2d0   : > { %s1058_s17 = scalar_lea.hbm %s1358_s14, 256  ;;  %s1062_s20 = scalar_lea.hbm %s1407_s7, 512 }
 0x2d1   : > { %p1059_p4 = scmp.ne.s32.totalorder %s1358_s14, %s1058_s17  ;;  %p1063_p9 = scmp.lt.s32.totalorder %s1358_s14, %s1407_s7 }
 0x2d2   : > { %p1064_p10 = scmp.lt.s32.totalorder %s1062_s20, %s1058_s17 }
 0x2d3   : > { %p1060_p7 = pnand %p1059_p4, %p1189_p5 }
 0x2d4   : > { %p1065_p11 = por %p1064_p10, %p1063_p9 }
 0x2d5   : > { %p1061_p8 = pneg %p1060_p7 }
 0x2d7   : > { %p1066_p12 = pnand %p1065_p11, %p1061_p8 }
 0x2d9   : > { %1069 = shalt.err (!%p1066_p12)
}
 0x2da   : > { %s1108_s29 = smov 128   ;;  %s1109_s8 = smov 256  }
 0x2db   : > { %s1110_s28 = smov 8  }
 0x2dc   : > { %999 = dma.vmem_to_hbm [thread:$0]  (%p1189_p5), %s1353_s22, 256, %s1358_s14, %s1360_s9, %s1108_s29, %s1109_s8, %s1110_s28  }
 0x2dd PF: > { %p1005_p13 = scmp.ge.s32.totalorder %s1104_s27, 2  ;;  %s792_s13 = sand.u32 1, %s1092_s24  }
 0x2de   : > { %s793_s15 = scalar_lea.sflag [#allocation3], %s792_s13 }
 0x2df   : > { %p1002_p0 = pnand %p1005_p13, %p1193_p6 }
 0x2e1   : > { %p1003_p1 = pneg %p1002_p0 }
 0x2e3   : > { %1087 = dma.done.wait (%p1003_p1), %s793_s15, 256  }
 0x2e4   : > { %1089 = vsyncadd (%p1003_p1), %s793_s15, 4294967040  ;;  %p17_p2 = scmp.ge.s32.totalorder %s1176_s30, 4   ;;  %s1410_s24 = smov %s1096_s25 }
 0x2e5   : > { %s1411_s25 = smov %s1100_s26  ;;  %s1412_s26 = smov %s1187_s10 }
 0x2e6   : > { %s1413_s27 = smov %s1176_s30  ;;  %19 = sbr.rel (!%p17_p2) target bundleno = 3 (0x3), region = 83 }
 0x2eb   :  { %798 = vsyncpa [#allocation3], 1 }
 0x2ec   :  { %800 = vsyncpa [#allocation3 + $0x1], 1 }

</bundles_post_ra>
